<compile_context>
chip_gen: v7x
topology: tpu7x:2x2x1
jax: 0.10.0
libtpu: 0.0.40
codegen_flags: <defaults>
</compile_context>

<pallas_src>
import functools

import jax
import jax.numpy as jnp
from jax.experimental import pallas as pl
from jax.experimental.pallas import tpu as pltpu


def _corr_kernel(a_ref, b_ref, o_ref):
    # a_ref: (1, TJ, C)  panel of A_t   (rows = feature_A positions, j = wa*H + ha)
    # b_ref: (1, C, TI)  slab/tile of B_flat (cols = feature_B positions, i = hb*W + wb)
    # o_ref: (1, TJ, TI)
    acc = jnp.dot(a_ref[0], b_ref[0], preferred_element_type=jnp.float32)
    o_ref[0] = acc.astype(o_ref.dtype)


def _round_up(x, m):
    return ((x + m - 1) // m) * m


def _pick_tiles(batch, c, hw, in_bytes, out_bytes, vmem_budget=16 * 1024 * 1024):
    """Pick (tj, ti) tiles for the (B, HW, HW) output."""
    # j tile: fixed lane/sublane-friendly 256 rows with a cdiv grid; a block equal to
    # the full dim is exempt from the sublane-multiple rule when HW < 256.
    tj = 256 if hw >= 256 else hw
    # v7x has 2 TensorCores: make sure there are >= 2 parallel grid points to shard.
    if batch * pl.cdiv(hw, tj) < 2 and hw >= 32:
        tj = _round_up(pl.cdiv(hw, 2), 16)

    # i tile: keep the whole B slab resident if the double-buffered working set fits;
    # otherwise fall back to 128-multiple tiles (B then gets re-fetched per j block).
    def need(ti):
        return 2 * (tj * c * in_bytes + c * ti * in_bytes + tj * ti * out_bytes)

    if need(hw) <= vmem_budget:
        ti = hw
    else:
        ti = 512
        while ti > 128 and need(ti) > vmem_budget:
            ti //= 2
        ti = min(ti, hw)
    return tj, ti


@functools.partial(jax.jit, static_argnames=("compute_dtype",))
def feature_correlation(feature_A, feature_B, *, compute_dtype=jnp.bfloat16):
    """feature_A, feature_B: [B, C, H, W]. Returns [B, H*W, H, W] in feature_A.dtype."""
    B, C, H, W = feature_A.shape
    assert feature_B.shape == (B, C, H, W)
    HW = H * W
    out_dtype = feature_A.dtype
    cdt = jnp.dtype(compute_dtype)
    out_bytes = jnp.dtype(out_dtype).itemsize

    # A_t[b, j, c] = A[b, c, ha, wa] with j = wa*H + ha (torch's transpose(2,3) flatten).
    # The compute-dtype cast is fused into this transpose by XLA (half-width writeback).
    a_t = jnp.transpose(feature_A.astype(cdt), (0, 3, 2, 1)).reshape(B, HW, C)
    # B_flat[b, c, i] = B[b, c, hb, wb] with i = hb*W + wb (pure reshape).
    b_flat = feature_B.astype(cdt).reshape(B, C, HW)

    tj, ti = _pick_tiles(B, C, HW, cdt.itemsize, out_bytes)
    grid = (B, pl.cdiv(HW, tj), pl.cdiv(HW, ti))

    out_mat = pl.pallas_call(
        _corr_kernel,
        out_shape=jax.ShapeDtypeStruct((B, HW, HW), out_dtype),
        grid=grid,
        in_specs=[
            # A_t row panel: constant across i, so it is fetched once per (b, j).
            pl.BlockSpec((1, tj, C), lambda b, j, i: (b, j, 0)),
            # B_flat: when ti == HW the block index is (b, 0, 0) for the whole batch
            # element, so Pallas DMAs it exactly once per b (VMEM-resident slab).
            pl.BlockSpec((1, C, ti), lambda b, j, i: (b, 0, i)),
        ],
        out_specs=pl.BlockSpec((1, tj, ti), lambda b, j, i: (b, j, i)),
        compiler_params=pltpu.CompilerParams(
            # Full C contraction happens inside one block, so every grid point is
            # independent -> all axes shardable across the 2 TensorCores on v7x.
            dimension_semantics=("parallel", "parallel", "parallel"),
            vmem_limit_bytes=32 * 1024 * 1024,
        ),
        cost_estimate=pl.CostEstimate(
            flops=2 * B * HW * HW * C,
            bytes_accessed=2 * B * HW * C * cdt.itemsize + B * HW * HW * out_bytes,
            transcendentals=0,
        ),
    )(a_t, b_flat)

    # [B, HW (feature_A positions), H, W (feature_B positions)] -- pure reshape.
    return out_mat.reshape(B, HW, H, W)


def _reference(feature_A, feature_B, compute_dtype=jnp.bfloat16):
    """JAX mirror of the PyTorch forward with the kernel's numerics
    (compute-dtype operands, exact f32 accumulation)."""
    B, C, H, W = feature_A.shape
    a = jnp.transpose(feature_A.astype(compute_dtype), (0, 1, 3, 2)).reshape(B, C, H * W)
    bf = feature_B.astype(compute_dtype).reshape(B, C, H * W)
    # m[b, i, j] = sum_c B'[b, i, c] * A'[b, c, j]
    m = jnp.einsum("bcn,bcm->bnm", bf.astype(jnp.float32), a.astype(jnp.float32))
    m = m.reshape(B, H, W, H * W)
    return jnp.transpose(m, (0, 3, 1, 2)).astype(feature_A.dtype)  # [B, HW, H, W]


if __name__ == "__main__":
    key = jax.random.PRNGKey(0)
    kA, kB = jax.random.split(key)
    Bsz, C, H, W = 2, 4, 16, 16
    fa = jax.random.normal(kA, (Bsz, C, H, W), dtype=jnp.float32)
    fb = jax.random.normal(kB, (Bsz, C, H, W), dtype=jnp.float32)

    out = feature_correlation(fa, fb)
    jax.block_until_ready(out)

    ref = _reference(fa, fb)
    assert out.shape == (Bsz, H * W, H, W), out.shape
    assert out.dtype == fa.dtype, out.dtype

    # Both kernel and reference use bf16 operands with f32 accumulation, so any
    # residual difference is accumulation-order rounding; an indexing/layout bug
    # would produce O(1) errors, far above this threshold.
    max_err = float(jnp.max(jnp.abs(out.astype(jnp.float32) - ref.astype(jnp.float32))))
    assert max_err < 1e-2, max_err

    print("KERNEL_OK")
</pallas_src>

<mosaic_0001>
module attributes {stable_mosaic.version = 11 : i64} {
  func.func @_corr_kernel(%arg0: i32, %arg1: i32, %arg2: i32, %arg3: memref<1x256x4xbf16, #tpu.memory_space<vmem>>, %arg4: memref<1x4x256xbf16, #tpu.memory_space<vmem>>, %arg5: memref<1x256x256xf32, #tpu.memory_space<vmem>>) attributes {dimension_semantics = [#tpu.dimension_semantics<parallel>, #tpu.dimension_semantics<parallel>, #tpu.dimension_semantics<parallel>], iteration_bounds = array<i64: 2, 1, 1>, scalar_prefetch = 0 : i64, scratch_operands = 0 : i64, tpu.core_type = #tpu.core_type<tc>, window_params = [{transform_indices = @transform_0, window_bounds = array<i64: 1, 256, 4>}, {transform_indices = @transform_1, window_bounds = array<i64: 1, 4, 256>}, {transform_indices = @transform_2, window_bounds = array<i64: 1, 256, 256>}]} {
    %c0 = arith.constant 0 : index
    %c0_0 = arith.constant 0 : index
    %c0_1 = arith.constant 0 : index
    %0 = vector.load %arg3[%c0, %c0_0, %c0_1] : memref<1x256x4xbf16, #tpu.memory_space<vmem>>, vector<1x256x4xbf16>
    %1 = vector.shape_cast %0 : vector<1x256x4xbf16> to vector<256x4xbf16>
    %c0_2 = arith.constant 0 : index
    %c0_3 = arith.constant 0 : index
    %c0_4 = arith.constant 0 : index
    %2 = vector.load %arg4[%c0_2, %c0_3, %c0_4] : memref<1x4x256xbf16, #tpu.memory_space<vmem>>, vector<1x4x256xbf16>
    %3 = vector.shape_cast %2 : vector<1x4x256xbf16> to vector<4x256xbf16>
    %cst = arith.constant dense<0.000000e+00> : vector<256x256xf32>
    %4 = tpu.matmul %1, %3, %cst {dimension_numbers = #tpu.dot_dimension_numbers<[1], [0], [0], [1], [0, 0, 1, 1], [], []>} : vector<256x4xbf16>, vector<4x256xbf16>, vector<256x256xf32> -> vector<256x256xf32>
    %c0_5 = arith.constant 0 : index
    %c0_6 = arith.constant 0 : index
    %c0_7 = arith.constant 0 : index
    %5 = vector.load %arg5[%c0_5, %c0_6, %c0_7] : memref<1x256x256xf32, #tpu.memory_space<vmem>>, vector<1x256x256xf32>
    %6 = vector.shape_cast %5 : vector<1x256x256xf32> to vector<256x256xf32>
    %7 = vector.shape_cast %4 : vector<256x256xf32> to vector<1x256x256xf32>
    tpu.vector_store %arg5[%c0_5, %c0_6, %c0_7], %7 {strides = array<i32>} : memref<1x256x256xf32, #tpu.memory_space<vmem>>, vector<1x256x256xf32>,
    return
  }
  func.func @transform_0(%arg0: i32, %arg1: i32, %arg2: i32) -> (i32, i32, i32) {
    %c0_i32 = arith.constant 0 : i32
    %c0_i32_0 = arith.constant 0 : i32
    return %arg0, %arg1, %c0_i32 : i32, i32, i32
  }
  func.func @transform_1(%arg0: i32, %arg1: i32, %arg2: i32) -> (i32, i32, i32) {
    %c0_i32 = arith.constant 0 : i32
    %c0_i32_0 = arith.constant 0 : i32
    return %arg0, %c0_i32, %arg2 : i32, i32, i32
  }
  func.func @transform_2(%arg0: i32, %arg1: i32, %arg2: i32) -> (i32, i32, i32) {
    %c0_i32 = arith.constant 0 : i32
    return %arg0, %arg1, %arg2 : i32, i32, i32
  }
}

</mosaic_0001>

<bundles_post_ra>
// kernel: feature_correlation.1
= control target key start
LH: loop header
LB: loop body
LE: loop exit
PB: predicated region body
PF: predicated region fallthrough
CT: control target
= control target key end

     0   :  { %s935_s9 = smov 0   ;;  %s937_s10 = smov 0   ;;  %s1076_s0 = inlined_call_operand.vmem [shape: bf16[2,256,4], index: 0, kind: input, shape index: {}]   ;;  %s1077_s1 = inlined_call_operand.vmem [shape: bf16[2,4,256], index: 1, kind: input, shape index: {}]   ;;  %s1078_s2 = inlined_call_operand.vmem [shape: f32[2,256,256], index: 2, kind: output, shape index: {}]  }
   0x1   :  { %s939_s11 = smov 0  }
   0x2 LB: > { %s31_s12 = sadd.s32 1, %s913_s10  ;;  %p806_p0 = scmp.ge.s32.totalorder %s917_s11, 1  ;;  %s917_s11 = sphi %s939_s11, %s12_s11   ;;  %s913_s10 = sphi %s937_s10, %s1080_s10   ;;  %s909_s9 = sphi %s935_s9, %s1079_s9  }
   0x3   : > { %p33_p1 = scmp.ge.s32.totalorder %s31_s12, 2  ;;  %p159_p2 = scmp.lt.s32.totalorder %s917_s11, 3 }
   0x5   : > { %s1082_s12 = smov (%p33_p1, %s31_s12), 0  ;;  %p160_p3 = pnand %p806_p0, %p159_p2 }
   0x6   : > { %p204_p4 = scmp.lt.s32.totalorder (!%p160_p3), %s909_s9, 1  ;;  %v919_v0 = vmov (!%p160_p3), 0   ;;  %vm411_vm0 = vcmask (!%p160_p3), 1041408   ;;  %vm362_vm1 = vcmask (!%p160_p3), 31744  }
   0x7   : > { %163 = sbr.rel (%p160_p3) target bundleno = 296 (0x128), region = 28  ;;  %450 = vmatprep.mubr.bf16.mxu0 (!%p160_p3), %v919_v0  ;;  %530 = vmatprep.mubr.bf16.mxu1 (!%p160_p3), %v919_v0 }
   0xe   : > { %s1084_s9 = smov (!%p204_p4, %s909_s9), 1 }
   0xf   : > { %s850_s13 = sshll.u32 %s1084_s9, 2  ;;  %s849_s14 = sshll.u32 %s1084_s9, 7 }
  0x10   : > { %s221_s17 = scalar_lea.vmem %s1077_s1, %s850_s13  ;;  %s963_s20 = scalar_lea.vmem %s1076_s0, %s849_s14 }
  0x11   : > { %v829_v1 = vld.sshfl [vmem:[%s221_s17] sm:$0x33 pattern:$0x76325410]  ;;  %v881_v6 = vld [vmem:[%s963_s20 + $0x8] sm:$0xff]   ;;  %v883_v8 = vld [vmem:[%s963_s20 + $0x10] sm:$0xff]  }
  0x12   : > { %v361_v2 = vcombine.high %v829_v1, %v829_v1  ;;  %v413_v3 = vsel %vm411_vm0, %v829_v1, 0  ;;  %v879_v4 = vld [vmem:[%s963_s20] sm:$0xff]   ;;  %v882_v7 = vld [vmem:[%s963_s20 + $0x48] sm:$0xff]   ;;  %v884_v9 = vld [vmem:[%s963_s20 + $0x50] sm:$0xff]   ;;  %s851_s21 = sshll.u32 %s1084_s9, 9 }
  0x13   : > { %v880_v5 = vld [vmem:[%s963_s20 + $0x40] sm:$0xff]   ;;  %v885_v10 = vld [vmem:[%s963_s20 + $0x18] sm:$0xff]   ;;  %v889_v14 = vld [vmem:[%s963_s20 + $0x28] sm:$0xff]   ;;  %s1001_s24 = scalar_lea.vmem %s1078_s2, %s851_s21 }
  0x14   : > { %830 = vmatprep.subr.msk.bf16.mxu0 %vm411_vm0, %v361_v2  ;;  %852 = vmatprep.subr.msk.bf16.mxu1 %vm411_vm0, %v361_v2  ;;  %v886_v11 = vld [vmem:[%s963_s20 + $0x58] sm:$0xff]   ;;  %v887_v12 = vld [vmem:[%s963_s20 + $0x20] sm:$0xff]   ;;  %v890_v15 = vld [vmem:[%s963_s20 + $0x68] sm:$0xff]  }
  0x15   : > { %419 = vmatpush1.bf16.msra.mxu0 %v413_v3  ;;  %853 = vmatpush1.bf16.msra.mxu1 %v413_v3  ;;  %v888_v13 = vld [vmem:[%s963_s20 + $0x60] sm:$0xff]   ;;  %v891_v16 = vld [vmem:[%s963_s20 + $0x30] sm:$0xff]   ;;  %v893_v18 = vld [vmem:[%s963_s20 + $0x38] sm:$0xff]  }
  0x16   : > { %v892_v17 = vld [vmem:[%s963_s20 + $0x70] sm:$0xff]   ;;  %v894_v19 = vld [vmem:[%s963_s20 + $0x78] sm:$0xff]  }
  0x18   : > { %831 = vmatmul.mubr.msk.bf16.vlgmr.msra.gmra.mrb[0].mxu0 %vm362_vm1, %v879_v4  ;;  %839 = vmatmul.mubr.msk.bf16.vlgmr.msra.gmra.mrb[0].mxu1 %vm362_vm1, %v880_v5 }
  0x19   : > { %460 = vmatprep.mubr.bf16.mxu0 %v919_v0  ;;  %540 = vmatprep.mubr.bf16.mxu1 %v919_v0 }
  0x20   : > { %832 = vmatmul.mubr.msk.bf16.gmra.mrb[4].mxu0 %vm362_vm1, %v881_v6  ;;  %840 = vmatmul.mubr.msk.bf16.gmra.mrb[4].mxu1 %vm362_vm1, %v882_v7 }
  0x21   : > { %470 = vmatprep.mubr.bf16.mxu0 %v919_v0  ;;  %550 = vmatprep.mubr.bf16.mxu1 %v919_v0 }
  0x28   : > { %833 = vmatmul.mubr.msk.bf16.gmra.mrb[8].mxu0 %vm362_vm1, %v883_v8  ;;  %841 = vmatmul.mubr.msk.bf16.gmra.mrb[8].mxu1 %vm362_vm1, %v884_v9 }
  0x29   : > { %480 = vmatprep.mubr.bf16.mxu0 %v919_v0  ;;  %560 = vmatprep.mubr.bf16.mxu1 %v919_v0 }
  0x30   : > { %834 = vmatmul.mubr.msk.bf16.gmra.mrb[12].mxu0 %vm362_vm1, %v885_v10  ;;  %842 = vmatmul.mubr.msk.bf16.gmra.mrb[12].mxu1 %vm362_vm1, %v886_v11 }
  0x31   : > { %490 = vmatprep.mubr.bf16.mxu0 %v919_v0  ;;  %570 = vmatprep.mubr.bf16.mxu1 %v919_v0 }
  0x38   : > { %835 = vmatmul.mubr.msk.bf16.gmra.mrb[16].mxu0 %vm362_vm1, %v887_v12  ;;  %843 = vmatmul.mubr.msk.bf16.gmra.mrb[16].mxu1 %vm362_vm1, %v888_v13 }
  0x39   : > { %500 = vmatprep.mubr.bf16.mxu0 %v919_v0  ;;  %580 = vmatprep.mubr.bf16.mxu1 %v919_v0 }
  0x40   : > { %836 = vmatmul.mubr.msk.bf16.gmra.mrb[20].mxu0 %vm362_vm1, %v889_v14  ;;  %844 = vmatmul.mubr.msk.bf16.gmra.mrb[20].mxu1 %vm362_vm1, %v890_v15 }
  0x41   : > { %510 = vmatprep.mubr.bf16.mxu0 %v919_v0  ;;  %590 = vmatprep.mubr.bf16.mxu1 %v919_v0 }
  0x48   : > { %837 = vmatmul.mubr.msk.bf16.gmra.mrb[24].mxu0 %vm362_vm1, %v891_v16  ;;  %845 = vmatmul.mubr.msk.bf16.gmra.mrb[24].mxu1 %vm362_vm1, %v892_v17 }
  0x49   : > { %520 = vmatprep.mubr.bf16.mxu0 %v919_v0  ;;  %600 = vmatprep.mubr.bf16.mxu1 %v919_v0 }
  0x50   : > { %838 = vmatmul.mubr.msk.bf16.gmra.mrb[28].mxu0 %vm362_vm1, %v893_v18  ;;  %846 = vmatmul.mubr.msk.bf16.gmra.mrb[28].mxu1 %vm362_vm1, %v894_v19 }
  0xeb   : > { %v452_v20 = vpop.f32.mrb[0].mxu0  ;;  %v532_v21 = vpop.f32.mrb[0].mxu1 }
  0xec   : > { %611 = vst [vmem:[%s1001_s24] sm:$0xff] %v452_v20  ;;  %643 = vst [vmem:[%s1001_s24 + $0x100] sm:$0xff] %v532_v21  ;;  %v454_v22 = vpop.f32.mrb[1].mxu0  ;;  %v534_v23 = vpop.f32.mrb[1].mxu1 }
  0xed   : > { %612 = vst [vmem:[%s1001_s24 + $0x8] sm:$0xff] %v454_v22  ;;  %644 = vst [vmem:[%s1001_s24 + $0x108] sm:$0xff] %v534_v23  ;;  %v456_v24 = vpop.f32.mrb[2].mxu0  ;;  %v536_v25 = vpop.f32.mrb[2].mxu1 }
  0xee   : > { %613 = vst [vmem:[%s1001_s24 + $0x10] sm:$0xff] %v456_v24  ;;  %645 = vst [vmem:[%s1001_s24 + $0x110] sm:$0xff] %v536_v25  ;;  %v458_v26 = vpop.f32.mrb[3].mxu0  ;;  %v538_v27 = vpop.f32.mrb[3].mxu1 }
  0xef   : > { %614 = vst [vmem:[%s1001_s24 + $0x18] sm:$0xff] %v458_v26  ;;  %646 = vst [vmem:[%s1001_s24 + $0x118] sm:$0xff] %v538_v27 }
  0xf3   : > { %v462_v28 = vpop.f32.mrb[4].mxu0  ;;  %v542_v29 = vpop.f32.mrb[4].mxu1 }
  0xf4   : > { %615 = vst [vmem:[%s1001_s24 + $0x20] sm:$0xff] %v462_v28  ;;  %647 = vst [vmem:[%s1001_s24 + $0x120] sm:$0xff] %v542_v29  ;;  %v464_v30 = vpop.f32.mrb[5].mxu0  ;;  %v544_v31 = vpop.f32.mrb[5].mxu1 }
  0xf5   : > { %616 = vst [vmem:[%s1001_s24 + $0x28] sm:$0xff] %v464_v30  ;;  %648 = vst [vmem:[%s1001_s24 + $0x128] sm:$0xff] %v544_v31  ;;  %v466_v32 = vpop.f32.mrb[6].mxu0  ;;  %v546_v33 = vpop.f32.mrb[6].mxu1 }
  0xf6   : > { %617 = vst [vmem:[%s1001_s24 + $0x30] sm:$0xff] %v466_v32  ;;  %649 = vst [vmem:[%s1001_s24 + $0x130] sm:$0xff] %v546_v33  ;;  %v468_v34 = vpop.f32.mrb[7].mxu0  ;;  %v548_v35 = vpop.f32.mrb[7].mxu1 }
  0xf7   : > { %618 = vst [vmem:[%s1001_s24 + $0x38] sm:$0xff] %v468_v34  ;;  %650 = vst [vmem:[%s1001_s24 + $0x138] sm:$0xff] %v548_v35 }
  0xfb   : > { %v472_v36 = vpop.f32.mrb[8].mxu0  ;;  %v552_v37 = vpop.f32.mrb[8].mxu1 }
  0xfc   : > { %619 = vst [vmem:[%s1001_s24 + $0x40] sm:$0xff] %v472_v36  ;;  %651 = vst [vmem:[%s1001_s24 + $0x140] sm:$0xff] %v552_v37  ;;  %v474_v38 = vpop.f32.mrb[9].mxu0  ;;  %v554_v39 = vpop.f32.mrb[9].mxu1 }
  0xfd   : > { %620 = vst [vmem:[%s1001_s24 + $0x48] sm:$0xff] %v474_v38  ;;  %652 = vst [vmem:[%s1001_s24 + $0x148] sm:$0xff] %v554_v39  ;;  %v476_v40 = vpop.f32.mrb[10].mxu0  ;;  %v556_v41 = vpop.f32.mrb[10].mxu1 }
  0xfe   : > { %621 = vst [vmem:[%s1001_s24 + $0x50] sm:$0xff] %v476_v40  ;;  %653 = vst [vmem:[%s1001_s24 + $0x150] sm:$0xff] %v556_v41  ;;  %v478_v42 = vpop.f32.mrb[11].mxu0  ;;  %v558_v43 = vpop.f32.mrb[11].mxu1 }
  0xff   : > { %622 = vst [vmem:[%s1001_s24 + $0x58] sm:$0xff] %v478_v42  ;;  %654 = vst [vmem:[%s1001_s24 + $0x158] sm:$0xff] %v558_v43 }
 0x103   : > { %v482_v44 = vpop.f32.mrb[12].mxu0  ;;  %v562_v45 = vpop.f32.mrb[12].mxu1 }
 0x104   : > { %623 = vst [vmem:[%s1001_s24 + $0x60] sm:$0xff] %v482_v44  ;;  %655 = vst [vmem:[%s1001_s24 + $0x160] sm:$0xff] %v562_v45  ;;  %v484_v46 = vpop.f32.mrb[13].mxu0  ;;  %v564_v47 = vpop.f32.mrb[13].mxu1 }
 0x105   : > { %624 = vst [vmem:[%s1001_s24 + $0x68] sm:$0xff] %v484_v46  ;;  %656 = vst [vmem:[%s1001_s24 + $0x168] sm:$0xff] %v564_v47  ;;  %v486_v48 = vpop.f32.mrb[14].mxu0  ;;  %v566_v49 = vpop.f32.mrb[14].mxu1 }
 0x106   : > { %625 = vst [vmem:[%s1001_s24 + $0x70] sm:$0xff] %v486_v48  ;;  %657 = vst [vmem:[%s1001_s24 + $0x170] sm:$0xff] %v566_v49  ;;  %v488_v50 = vpop.f32.mrb[15].mxu0  ;;  %v568_v51 = vpop.f32.mrb[15].mxu1 }
 0x107   : > { %626 = vst [vmem:[%s1001_s24 + $0x78] sm:$0xff] %v488_v50  ;;  %658 = vst [vmem:[%s1001_s24 + $0x178] sm:$0xff] %v568_v51 }
 0x10b   : > { %v492_v52 = vpop.f32.mrb[16].mxu0  ;;  %v572_v53 = vpop.f32.mrb[16].mxu1 }
 0x10c   : > { %627 = vst [vmem:[%s1001_s24 + $0x80] sm:$0xff] %v492_v52  ;;  %659 = vst [vmem:[%s1001_s24 + $0x180] sm:$0xff] %v572_v53  ;;  %v494_v54 = vpop.f32.mrb[17].mxu0  ;;  %v574_v55 = vpop.f32.mrb[17].mxu1 }
 0x10d   : > { %628 = vst [vmem:[%s1001_s24 + $0x88] sm:$0xff] %v494_v54  ;;  %660 = vst [vmem:[%s1001_s24 + $0x188] sm:$0xff] %v574_v55  ;;  %v496_v56 = vpop.f32.mrb[18].mxu0  ;;  %v576_v57 = vpop.f32.mrb[18].mxu1 }
 0x10e   : > { %629 = vst [vmem:[%s1001_s24 + $0x90] sm:$0xff] %v496_v56  ;;  %661 = vst [vmem:[%s1001_s24 + $0x190] sm:$0xff] %v576_v57  ;;  %v498_v58 = vpop.f32.mrb[19].mxu0  ;;  %v578_v59 = vpop.f32.mrb[19].mxu1 }
 0x10f   : > { %630 = vst [vmem:[%s1001_s24 + $0x98] sm:$0xff] %v498_v58  ;;  %662 = vst [vmem:[%s1001_s24 + $0x198] sm:$0xff] %v578_v59 }
 0x113   : > { %v502_v60 = vpop.f32.mrb[20].mxu0  ;;  %v582_v61 = vpop.f32.mrb[20].mxu1 }
 0x114   : > { %631 = vst [vmem:[%s1001_s24 + $0xa0] sm:$0xff] %v502_v60  ;;  %663 = vst [vmem:[%s1001_s24 + $0x1a0] sm:$0xff] %v582_v61  ;;  %v504_v62 = vpop.f32.mrb[21].mxu0  ;;  %v584_v63 = vpop.f32.mrb[21].mxu1 }
 0x115   : > { %632 = vst [vmem:[%s1001_s24 + $0xa8] sm:$0xff] %v504_v62  ;;  %664 = vst [vmem:[%s1001_s24 + $0x1a8] sm:$0xff] %v584_v63  ;;  %v506_v0 = vpop.f32.mrb[22].mxu0  ;;  %v586_v1 = vpop.f32.mrb[22].mxu1 }
 0x116   : > { %633 = vst [vmem:[%s1001_s24 + $0xb0] sm:$0xff] %v506_v0  ;;  %665 = vst [vmem:[%s1001_s24 + $0x1b0] sm:$0xff] %v586_v1  ;;  %v508_v2 = vpop.f32.mrb[23].mxu0  ;;  %v588_v3 = vpop.f32.mrb[23].mxu1 }
 0x117   : > { %634 = vst [vmem:[%s1001_s24 + $0xb8] sm:$0xff] %v508_v2  ;;  %666 = vst [vmem:[%s1001_s24 + $0x1b8] sm:$0xff] %v588_v3 }
 0x11b   : > { %v512_v4 = vpop.f32.mrb[24].mxu0  ;;  %v592_v5 = vpop.f32.mrb[24].mxu1 }
 0x11c   : > { %635 = vst [vmem:[%s1001_s24 + $0xc0] sm:$0xff] %v512_v4  ;;  %667 = vst [vmem:[%s1001_s24 + $0x1c0] sm:$0xff] %v592_v5  ;;  %v514_v6 = vpop.f32.mrb[25].mxu0  ;;  %v594_v7 = vpop.f32.mrb[25].mxu1 }
 0x11d   : > { %636 = vst [vmem:[%s1001_s24 + $0xc8] sm:$0xff] %v514_v6  ;;  %668 = vst [vmem:[%s1001_s24 + $0x1c8] sm:$0xff] %v594_v7  ;;  %v516_v8 = vpop.f32.mrb[26].mxu0  ;;  %v596_v9 = vpop.f32.mrb[26].mxu1 }
 0x11e   : > { %637 = vst [vmem:[%s1001_s24 + $0xd0] sm:$0xff] %v516_v8  ;;  %669 = vst [vmem:[%s1001_s24 + $0x1d0] sm:$0xff] %v596_v9  ;;  %v518_v10 = vpop.f32.mrb[27].mxu0  ;;  %v598_v11 = vpop.f32.mrb[27].mxu1 }
 0x11f   : > { %638 = vst [vmem:[%s1001_s24 + $0xd8] sm:$0xff] %v518_v10  ;;  %670 = vst [vmem:[%s1001_s24 + $0x1d8] sm:$0xff] %v598_v11 }
 0x123   : > { %v522_v12 = vpop.f32.mrb[28].mxu0  ;;  %v602_v13 = vpop.f32.mrb[28].mxu1 }
 0x124   : > { %639 = vst [vmem:[%s1001_s24 + $0xe0] sm:$0xff] %v522_v12  ;;  %671 = vst [vmem:[%s1001_s24 + $0x1e0] sm:$0xff] %v602_v13  ;;  %v524_v14 = vpop.f32.mrb[29].mxu0  ;;  %v604_v15 = vpop.f32.mrb[29].mxu1 }
 0x125   : > { %640 = vst [vmem:[%s1001_s24 + $0xe8] sm:$0xff] %v524_v14  ;;  %672 = vst [vmem:[%s1001_s24 + $0x1e8] sm:$0xff] %v604_v15  ;;  %v526_v16 = vpop.f32.mrb[30].mxu0  ;;  %v606_v17 = vpop.f32.mrb[30].mxu1 }
 0x126   : > { %641 = vst [vmem:[%s1001_s24 + $0xf0] sm:$0xff] %v526_v16  ;;  %673 = vst [vmem:[%s1001_s24 + $0x1f0] sm:$0xff] %v606_v17  ;;  %v528_v18 = vpop.f32.mrb[31].mxu0  ;;  %v608_v19 = vpop.f32.mrb[31].mxu1 }
 0x127   : > { %642 = vst [vmem:[%s1001_s24 + $0xf8] sm:$0xff] %v528_v18  ;;  %674 = vst [vmem:[%s1001_s24 + $0x1f8] sm:$0xff] %v608_v19 }
 0x128 PF: > { %s12_s11 = sadd.s32 1, %s917_s11   ;;  %s1079_s9 = smov %s913_s10 }
 0x129   : > { %p9_p5 = scmp.ge.s32.totalorder %s12_s11, 4   ;;  %s1080_s10 = smov %s1082_s12 }
 0x12b   :  { %11 = sbr.rel (!%p9_p5) target bundleno = 2 (0x2), region = 61 }

</bundles_post_ra>
